<compile_context>
chip_gen: v6e
topology: v6e:2x2x1
jax: 0.10.0
libtpu: 0.0.40
codegen_flags: <defaults>
</compile_context>

<pallas_src>
import functools

import jax
import jax.numpy as jnp
from jax.experimental import pallas as pl
from jax.experimental.pallas import tpu as pltpu

# Lane widths tried in order (all multiples of 128 -> unmasked full-lane stores).
_LANE_CANDIDATES = (512, 256, 128)


def _ceil_to(a: int, m: int) -> int:
    return -(-a // m) * m


def _scale_kernel(x_ref, o_ref, *, p):
    # Pure VPU elementwise: out = p * x.  `p` is a weak-typed Python float baked at
    # compile time, so the multiply stays in x's dtype (f32/bf16/f16).
    o_ref[...] = x_ref[...] * p


def dropout_infer(x: jax.Array, p, *,
                  target_block_bytes: int = 2 << 20,     # ~2 MiB per VMEM buffer
                  xla_bytes_threshold: int = 256 * 1024,  # tiny-input fast path
                  donate_input: bool = False) -> jax.Array:
    """Inference-mode legacy dropout: out = p * x (matches _DropoutInfer.forward)."""
    p = float(p)  # static at trace time; distinct p values recompile (by design)
    orig_shape = x.shape
    dtype = x.dtype
    total = x.size
    itemsize = jnp.dtype(dtype).itemsize

    # Fast paths: non-float dtypes (avoid silent promotion issues in the kernel) and
    # tiny tensors where launch overhead dominates -> fused XLA multiply.
    if (not jnp.issubdtype(dtype, jnp.floating)) or total == 0 \
            or total * itemsize < xla_bytes_threshold:
        return p * x

    lanes = next((l for l in _LANE_CANDIDATES if total % l == 0), None)
    if lanes is None:
        # TODO(synk): flat sizes not divisible by 128 fall back to XLA's fused
        # elementwise multiply — it is already HBM-bandwidth optimal, whereas pad
        # or bulk+tail+concat paths would re-stream the tensor an extra time.
        return p * x

    rows = total // lanes
    # Sublane packing per dtype: f32 -> 8, bf16/f16 -> 16, int8/fp8 -> 32.
    pack = max(8, 32 // itemsize)

    if rows <= pack:
        # Block covers the full (tiny) row extent — always layout-legal.
        block_rows = rows
    else:
        # Size blocks by bytes (multiple of `pack`), capped so the grid has >= 2
        # steps (lets the "parallel" axis shard across v7x's two TensorCores).
        by_bytes = max(pack, (target_block_bytes // (lanes * itemsize)) // pack * pack)
        half_rows = _ceil_to((rows + 1) // 2, pack)
        block_rows = min(by_bytes, half_rows)

    num_blocks = -(-rows // block_rows)  # ragged last block is masked by Pallas

    x2d = x.reshape(rows, lanes)  # contiguous reshape: free bitcast, no HBM copy

    call_kwargs = dict(
        out_shape=jax.ShapeDtypeStruct((rows, lanes), dtype),
        grid=(num_blocks,),
        in_specs=[pl.BlockSpec((block_rows, lanes), lambda i: (i, 0))],
        out_specs=pl.BlockSpec((block_rows, lanes), lambda i: (i, 0)),
        compiler_params=pltpu.CompilerParams(
            dimension_semantics=("parallel",),
        ),
        # Advisory: one mul per element, pure HBM stream (read + write).
        cost_estimate=pl.CostEstimate(
            flops=total, transcendentals=0, bytes_accessed=2 * total * itemsize),
    )
    if donate_input:
        # Only beneficial when the caller donates x; otherwise XLA inserts a
        # defensive copy to satisfy the aliasing, which would add HBM traffic.
        call_kwargs["input_output_aliases"] = {0: 0}

    out2d = pl.pallas_call(
        functools.partial(_scale_kernel, p=p), **call_kwargs)(x2d)

    return out2d.reshape(orig_shape)  # free bitcast


if __name__ == "__main__":
    key = jax.random.PRNGKey(0)
    x = jax.random.normal(key, (2, 4, 16, 16), dtype=jnp.float32)
    p = 0.5
    expected = p * x  # the PyTorch module literally returns p * input

    # 1) Force the Pallas path even for this small test tensor (single-block grid,
    #    block second-to-last dim == full array extent).
    out = dropout_infer(x, p, xla_bytes_threshold=0)
    jax.block_until_ready(out)
    assert out.shape == x.shape and out.dtype == x.dtype
    assert jnp.allclose(out, expected, atol=1e-6, rtol=1e-6), "mismatch (pallas path)"

    # 2) Default call: tiny input takes the XLA fast path; must agree.
    out2 = dropout_infer(x, p)
    jax.block_until_ready(out2)
    assert jnp.allclose(out2, expected, atol=1e-6, rtol=1e-6), "mismatch (fast path)"

    # 3) Slightly larger bf16 input exercising the multi-block pipelined grid
    #    (rows=64, block_rows=32 -> 2 parallel grid steps).
    x3 = jax.random.normal(jax.random.PRNGKey(1), (2, 16, 32, 32), dtype=jnp.bfloat16)
    out3 = dropout_infer(x3, p, xla_bytes_threshold=0)
    jax.block_until_ready(out3)
    assert out3.dtype == x3.dtype
    assert jnp.allclose(out3.astype(jnp.float32),
                        (p * x3).astype(jnp.float32), atol=1e-2, rtol=1e-2), \
        "mismatch (multi-block pallas path)"

    print("KERNEL_OK")
</pallas_src>

<mosaic_0001>
module attributes {stable_mosaic.version = 11 : i64} {
  func.func @_scale_kernel(%arg0: i32, %arg1: memref<4x512xf32, #tpu.memory_space<vmem>>, %arg2: memref<4x512xf32, #tpu.memory_space<vmem>>) attributes {dimension_semantics = [#tpu.dimension_semantics<parallel>], iteration_bounds = array<i64: 1>, scalar_prefetch = 0 : i64, scratch_operands = 0 : i64, tpu.core_type = #tpu.core_type<tc>, window_params = [{transform_indices = @transform_0, window_bounds = array<i64: 4, 512>}, {transform_indices = @transform_1, window_bounds = array<i64: 4, 512>}]} {
    %c0 = arith.constant 0 : index
    %c0_0 = arith.constant 0 : index
    %0 = vector.load %arg1[%c0, %c0_0] : memref<4x512xf32, #tpu.memory_space<vmem>>, vector<4x512xf32>
    %cst = arith.constant 5.000000e-01 : f32
    %1 = vector.broadcast %cst : f32 to vector<4x512xf32>
    %2 = arith.mulf %0, %1 : vector<4x512xf32>
    %c0_1 = arith.constant 0 : index
    %c0_2 = arith.constant 0 : index
    %3 = vector.load %arg2[%c0_1, %c0_2] : memref<4x512xf32, #tpu.memory_space<vmem>>, vector<4x512xf32>
    tpu.vector_store %arg2[%c0_1, %c0_2], %2 {strides = array<i32>} : memref<4x512xf32, #tpu.memory_space<vmem>>, vector<4x512xf32>,
    return
  }
  func.func @transform_0(%arg0: i32) -> (i32, i32) {
    %c0_i32 = arith.constant 0 : i32
    %c0_i32_0 = arith.constant 0 : i32
    return %arg0, %c0_i32 : i32, i32
  }
  func.func @transform_1(%arg0: i32) -> (i32, i32) {
    %c0_i32 = arith.constant 0 : i32
    %c0_i32_0 = arith.constant 0 : i32
    return %arg0, %c0_i32 : i32, i32
  }
}

</mosaic_0001>

<bundles_post_ra>
// kernel: tpu_custom_call.1
= control target key start
LH: loop header
LB: loop body
LE: loop exit
PB: predicated region body
PF: predicated region fallthrough
CT: control target
= control target key end

     0   :  { %6 = vsyncpa [#allocation3], 0  ;;  %s106_s0 = inlined_call_operand.hbm [shape: f32[4,512], index: 0, kind: input, shape index: {}]   ;;  %s107_s1 = inlined_call_operand.hbm [shape: f32[4,512], index: 1, kind: output, shape index: {}]  }
   0x1   :  { %7 = vsyncpa [#allocation4], 0  ;;  %s88_s6 = smov [#allocation2]  }
   0x2   :  { %s14_s7 = sshll.u32 %s88_s6, 4  ;;  %s15_s7 = int_to_ptr.vmem [resolvable:$true] %s14_s7 }
   0x3   :  { %s52_s8 = scalar_lea.vmem %s15_s7, 256  ;;  %p57_p1 = scmp.lt.s32.totalorder %s15_s7, %s15_s7 }
   0x4   :  { %p53_p0 = scmp.ne.s32.totalorder %s15_s7, %s52_s8  ;;  %p58_p2 = scmp.lt.s32.totalorder %s52_s8, %s52_s8 }
   0x6   :  { %p59_p3 = por %p58_p2, %p57_p1 }
   0x8   :  { %p60_p4 = pnand %p59_p3, %p53_p0 }
   0xa   :  { %63 = shalt.err (!%p60_p4)
}
   0xb   :  { %17 = dma.hbm_to_vmem [thread:$0]  %s106_s0, 256, %s15_s7, [#allocation3]  }
   0xc   :  { %84 = dma.done.wait [#allocation3], 256  }
   0xd   :  { %85 = vsyncadd [#allocation3], 4294967040  ;;  %s89_s11 = smov [#allocation5]   ;;  %v21_v0 = vld [vmem:[#allocation2] sm:$0xff]  ;;  %v22_v1 = vld [vmem:[#allocation2 + $0x8] sm:$0xff] }
   0xe   :  { %s33_s12 = sshll.u32 %s89_s11, 4  ;;  %v23_v2 = vmul.f32 0.5, %v21_v0  ;;  %v24_v3 = vmul.f32 0.5, %v22_v1  ;;  %s34_s12 = int_to_ptr.vmem [resolvable:$true] %s33_s12 }
   0xf   :  { %s64_s13 = scalar_lea.vmem %s34_s12, 256  ;;  %p69_p6 = scmp.lt.s32.totalorder %s34_s12, %s34_s12 }
  0x10   :  { %25 = vst [vmem:[#allocation5] sm:$0xff] %v23_v2  ;;  %26 = vst [vmem:[#allocation5 + $0x8] sm:$0xff] %v24_v3  ;;  %p65_p5 = scmp.ne.s32.totalorder %s34_s12, %s64_s13  ;;  %p70_p7 = scmp.lt.s32.totalorder %s64_s13, %s64_s13 }
  0x12   :  { %p71_p8 = por %p70_p7, %p69_p6 }
  0x14   :  { %p72_p9 = pnand %p71_p8, %p65_p5 }
  0x16   :  { %75 = shalt.err (!%p72_p9)
}
  0x17   :  { %36 = dma.vmem_to_hbm [thread:$0]  %s34_s12, 256, %s107_s1, [#allocation4]  }
  0x18   :  { %86 = dma.done.wait [#allocation4], 256  }
  0x19   :  { %87 = vsyncadd [#allocation4], 4294967040 }
  0x1a   :  { %40 = vsyncpa [#allocation3], 1 }
  0x1b   :  { %41 = vsyncpa [#allocation4], 1 }

</bundles_post_ra>
